<compile_context>
chip_gen: v6e
topology: v6e:2x2x1
jax: 0.10.0
libtpu: 0.0.40
codegen_flags: <defaults>
</compile_context>

<pallas_src>
import functools

import jax
import jax.numpy as jnp
from jax.experimental import pallas as pl
from jax.experimental.pallas import tpu as pltpu

ENCODER_FEATURE_DIM = 32
ACTION_SHAPE = 5
LAYER_WIDTH = 64
LN_EPS = 1e-5  # torch.nn.LayerNorm default


def _round_up(n, m):
    return ((n + m - 1) // m) * m


def transition_kernel(x_ref, w1_ref, b1_ref, gamma_ref, beta_ref,
                      w2_ref, b2_ref, mu_ref):
    # --- fc: x @ W1 + b1  (MXU, f32 accumulation); x cast in-kernel ---
    x = x_ref[...].astype(w1_ref.dtype)
    h = jnp.dot(x, w1_ref[...],
                preferred_element_type=jnp.float32) + b1_ref[...]

    # --- LayerNorm over last dim, f32 (VPU/XLU; EUP rsqrt) ---
    mean = jnp.mean(h, axis=-1, keepdims=True)
    centered = h - mean
    var = jnp.mean(centered * centered, axis=-1, keepdims=True)
    scale = gamma_ref[...] * jax.lax.rsqrt(var + LN_EPS)
    hn = centered * scale + beta_ref[...]

    # --- ReLU ---
    hn = jnp.maximum(hn, 0.0)

    # --- fc_mu: hn @ W2 + b2  (MXU, f32 accumulation) ---
    mu = jnp.dot(hn.astype(w2_ref.dtype), w2_ref[...],
                 preferred_element_type=jnp.float32) + b2_ref[...]
    mu_ref[...] = mu.astype(mu_ref.dtype)


def prepare_params(params, compute_dtype=jnp.float32):
    """One-time parameter prep (do this OUTSIDE the per-call forward):
    matmul weights cast to compute_dtype (bf16 halves resident footprint on
    v6e/v7x and is MXU-native); biases / LN params stay f32, shaped (1, dim)."""
    w1, b1, gamma, beta, w2, b2 = params
    return (w1.astype(compute_dtype),
            jnp.asarray(b1, jnp.float32).reshape(1, -1),
            jnp.asarray(gamma, jnp.float32).reshape(1, -1),
            jnp.asarray(beta, jnp.float32).reshape(1, -1),
            w2.astype(compute_dtype),
            jnp.asarray(b2, jnp.float32).reshape(1, -1))


def _choose_tb(B, block_b):
    """Batch tile: multiple of 8, capped by block_b. If the whole batch would
    fit in one step, split into two so 'parallel' uses both TCs on v7x."""
    tb_full = _round_up(max(B, 8), 8)      # smallest aligned tile covering B
    tb = min(block_b, tb_full)
    if tb == tb_full and B > 8:            # would be a 1-step grid -> split
        tb = _round_up(-(-B // 2), 8)
    return tb


@functools.partial(jax.jit, static_argnames=("tb", "out_dtype"))
def _forward_impl(x, w1, b1, gamma, beta, w2, b2, *, tb, out_dtype):
    B, in_dim = x.shape
    H = w1.shape[1]
    feat = w2.shape[1]

    grid = (pl.cdiv(B, tb),)               # ragged last block handled by Pallas
    resident = lambda shape: pl.BlockSpec(shape, lambda i: (0, 0))
    # TODO(synk): resident specs could use pipeline_mode=pl.Buffered(1) to drop
    # their second VMEM buffer; omitted to keep compatibility across jax versions.

    return pl.pallas_call(
        transition_kernel,
        out_shape=jax.ShapeDtypeStruct((B, feat), out_dtype),
        grid=grid,
        in_specs=[
            pl.BlockSpec((tb, in_dim), lambda i: (i, 0)),   # x tile streams
            resident((in_dim, H)),                          # W1
            resident((1, H)),                               # b1
            resident((1, H)),                               # gamma
            resident((1, H)),                               # beta
            resident((H, feat)),                            # W2
            resident((1, feat)),                            # b2
        ],
        out_specs=pl.BlockSpec((tb, feat), lambda i: (i, 0)),
        compiler_params=pltpu.CompilerParams(
            dimension_semantics=("parallel",)),
    )(x, w1, b1, gamma, beta, w2, b2)


def deterministic_transition_forward(x, prepared_params, *, block_b=2048,
                                     out_dtype=jnp.float32):
    """x: (B, encoder_feature_dim + action_shape) -> (mu, None)."""
    tb = _choose_tb(x.shape[0], block_b)
    mu = _forward_impl(x, *prepared_params, tb=tb, out_dtype=out_dtype)
    return mu, None


def sample_prediction(x, prepared_params, **kw):
    mu, _ = deterministic_transition_forward(x, prepared_params, **kw)
    return mu


def init_params(key, encoder_feature_dim, action_shape, layer_width):
    """Deterministic synthetic init mirroring the module's parameter shapes.
    Linear weights are stored pre-transposed: (in_features, out_features)."""
    in_dim = encoder_feature_dim + action_shape
    k1, k2, k3, k4 = jax.random.split(key, 4)
    w1 = jax.random.normal(k1, (in_dim, layer_width), jnp.float32) * 0.05
    b1 = jax.random.normal(k2, (layer_width,), jnp.float32) * 0.05
    gamma = jnp.ones((layer_width,), jnp.float32)
    beta = jnp.zeros((layer_width,), jnp.float32)
    w2 = jax.random.normal(k3, (layer_width, encoder_feature_dim), jnp.float32) * 0.05
    b2 = jax.random.normal(k4, (encoder_feature_dim,), jnp.float32) * 0.05
    return w1, b1, gamma, beta, w2, b2


def reference_forward(x, params, compute_dtype=jnp.float32):
    """Pure-JAX reference of the PyTorch forward (same dtype casts as kernel)."""
    w1, b1, gamma, beta, w2, b2 = params
    h = jnp.dot(x.astype(compute_dtype), w1.astype(compute_dtype),
                preferred_element_type=jnp.float32) + b1
    mean = jnp.mean(h, axis=-1, keepdims=True)
    var = jnp.mean((h - mean) ** 2, axis=-1, keepdims=True)
    hn = (h - mean) / jnp.sqrt(var + LN_EPS) * gamma + beta
    hn = jnp.maximum(hn, 0.0)
    return jnp.dot(hn.astype(compute_dtype), w2.astype(compute_dtype),
                   preferred_element_type=jnp.float32) + b2


if __name__ == "__main__":
    key = jax.random.PRNGKey(0)
    kx, kx2, kp = jax.random.split(key, 3)
    in_dim = ENCODER_FEATURE_DIM + ACTION_SHAPE
    params = init_params(kp, ENCODER_FEATURE_DIM, ACTION_SHAPE, LAYER_WIDTH)

    # --- small-batch f32 path (matches PyTorch numerics) ---
    prep_f32 = prepare_params(params, jnp.float32)
    x_small = jax.random.normal(kx, (8, in_dim), jnp.float32)
    mu, sigma = deterministic_transition_forward(x_small, prep_f32)
    mu = jax.block_until_ready(mu)
    assert sigma is None
    assert mu.shape == (8, ENCODER_FEATURE_DIM)
    assert mu.dtype == jnp.float32
    ref = reference_forward(x_small, params)
    assert jnp.allclose(mu, ref, atol=1e-4, rtol=1e-4), "f32 mismatch vs reference"

    # --- larger batch: ragged 2-step grid + bf16 matmul operands ---
    prep_bf16 = prepare_params(params, jnp.bfloat16)
    x_big = jax.random.normal(kx2, (300, in_dim), jnp.float32)
    mu_bf16, _ = deterministic_transition_forward(x_big, prep_bf16)
    mu_bf16 = jax.block_until_ready(mu_bf16)
    assert mu_bf16.shape == (300, ENCODER_FEATURE_DIM)
    assert mu_bf16.dtype == jnp.float32
    ref_bf16 = reference_forward(x_big, params, compute_dtype=jnp.bfloat16)
    assert jnp.allclose(mu_bf16, ref_bf16, atol=5e-3, rtol=5e-3), \
        "bf16 mismatch vs reference"

    print("KERNEL_OK")
</pallas_src>

<mosaic_0001>
module attributes {stable_mosaic.version = 11 : i64} {
  func.func @transition_kernel(%arg0: i32, %arg1: memref<8x37xf32, #tpu.memory_space<vmem>>, %arg2: memref<37x64xf32, #tpu.memory_space<vmem>>, %arg3: memref<1x64xf32, #tpu.memory_space<vmem>>, %arg4: memref<1x64xf32, #tpu.memory_space<vmem>>, %arg5: memref<1x64xf32, #tpu.memory_space<vmem>>, %arg6: memref<64x32xf32, #tpu.memory_space<vmem>>, %arg7: memref<1x32xf32, #tpu.memory_space<vmem>>, %arg8: memref<8x32xf32, #tpu.memory_space<vmem>>) attributes {dimension_semantics = [#tpu.dimension_semantics<parallel>], iteration_bounds = array<i64: 1>, scalar_prefetch = 0 : i64, scratch_operands = 0 : i64, tpu.core_type = #tpu.core_type<tc>, window_params = [{transform_indices = @transform_0, window_bounds = array<i64: 8, 37>}, {pipeline_mode = #tpu.pipeline_mode<synchronous>, transform_indices = @transform_1, window_bounds = array<i64: 37, 64>}, {pipeline_mode = #tpu.pipeline_mode<synchronous>, transform_indices = @transform_2, window_bounds = array<i64: 1, 64>}, {pipeline_mode = #tpu.pipeline_mode<synchronous>, transform_indices = @transform_3, window_bounds = array<i64: 1, 64>}, {pipeline_mode = #tpu.pipeline_mode<synchronous>, transform_indices = @transform_4, window_bounds = array<i64: 1, 64>}, {pipeline_mode = #tpu.pipeline_mode<synchronous>, transform_indices = @transform_5, window_bounds = array<i64: 64, 32>}, {pipeline_mode = #tpu.pipeline_mode<synchronous>, transform_indices = @transform_6, window_bounds = array<i64: 1, 32>}, {transform_indices = @transform_7, window_bounds = array<i64: 8, 32>}]} {
    %c0 = arith.constant 0 : index
    %c0_0 = arith.constant 0 : index
    %0 = vector.load %arg1[%c0, %c0_0] : memref<8x37xf32, #tpu.memory_space<vmem>>, vector<8x37xf32>
    %c0_1 = arith.constant 0 : index
    %c0_2 = arith.constant 0 : index
    %1 = vector.load %arg2[%c0_1, %c0_2] : memref<37x64xf32, #tpu.memory_space<vmem>>, vector<37x64xf32>
    %cst = arith.constant dense<0.000000e+00> : vector<8x64xf32>
    %2 = tpu.matmul %0, %1, %cst {dimension_numbers = #tpu.dot_dimension_numbers<[1], [0], [0], [1], [0, 0, 1, 1], [], []>} : vector<8x37xf32>, vector<37x64xf32>, vector<8x64xf32> -> vector<8x64xf32>
    %c0_3 = arith.constant 0 : index
    %c0_4 = arith.constant 0 : index
    %3 = vector.load %arg3[%c0_3, %c0_4] : memref<1x64xf32, #tpu.memory_space<vmem>>, vector<1x64xf32>
    %4 = vector.broadcast %3 : vector<1x64xf32> to vector<8x64xf32>
    %5 = arith.addf %2, %4 : vector<8x64xf32>
    %cst_5 = arith.constant dense<0.000000e+00> : vector<8xf32>
    %6 = vector.multi_reduction <add>, %5, %cst_5 [1] : vector<8x64xf32> to vector<8xf32>
    %7 = vector.shape_cast %6 : vector<8xf32> to vector<8x1xf32>
    %cst_6 = arith.constant 6.400000e+01 : f32
    %8 = vector.broadcast %cst_6 : f32 to vector<8x1xf32>
    %9 = arith.divf %7, %8 : vector<8x1xf32>
    %10 = vector.broadcast %9 : vector<8x1xf32> to vector<8x64xf32>
    %11 = arith.subf %5, %10 : vector<8x64xf32>
    %12 = arith.mulf %11, %11 : vector<8x64xf32>
    %cst_7 = arith.constant dense<0.000000e+00> : vector<8xf32>
    %13 = vector.multi_reduction <add>, %12, %cst_7 [1] : vector<8x64xf32> to vector<8xf32>
    %14 = vector.shape_cast %13 : vector<8xf32> to vector<8x1xf32>
    %cst_8 = arith.constant 6.400000e+01 : f32
    %15 = vector.broadcast %cst_8 : f32 to vector<8x1xf32>
    %16 = arith.divf %14, %15 : vector<8x1xf32>
    %c0_9 = arith.constant 0 : index
    %c0_10 = arith.constant 0 : index
    %17 = vector.load %arg4[%c0_9, %c0_10] : memref<1x64xf32, #tpu.memory_space<vmem>>, vector<1x64xf32>
    %cst_11 = arith.constant 9.99999974E-6 : f32
    %18 = vector.broadcast %cst_11 : f32 to vector<8x1xf32>
    %19 = arith.addf %16, %18 : vector<8x1xf32>
    %20 = math.rsqrt %19 : vector<8x1xf32>
    %21 = vector.broadcast %17 : vector<1x64xf32> to vector<8x64xf32>
    %22 = vector.broadcast %20 : vector<8x1xf32> to vector<8x64xf32>
    %23 = arith.mulf %21, %22 : vector<8x64xf32>
    %24 = arith.mulf %11, %23 : vector<8x64xf32>
    %c0_12 = arith.constant 0 : index
    %c0_13 = arith.constant 0 : index
    %25 = vector.load %arg5[%c0_12, %c0_13] : memref<1x64xf32, #tpu.memory_space<vmem>>, vector<1x64xf32>
    %26 = vector.broadcast %25 : vector<1x64xf32> to vector<8x64xf32>
    %27 = arith.addf %24, %26 : vector<8x64xf32>
    %cst_14 = arith.constant 0.000000e+00 : f32
    %28 = vector.broadcast %cst_14 : f32 to vector<8x64xf32>
    %29 = arith.maximumf %27, %28 : vector<8x64xf32>
    %c0_15 = arith.constant 0 : index
    %c0_16 = arith.constant 0 : index
    %30 = vector.load %arg6[%c0_15, %c0_16] : memref<64x32xf32, #tpu.memory_space<vmem>>, vector<64x32xf32>
    %cst_17 = arith.constant dense<0.000000e+00> : vector<8x32xf32>
    %31 = tpu.matmul %29, %30, %cst_17 {dimension_numbers = #tpu.dot_dimension_numbers<[1], [0], [0], [1], [0, 0, 1, 1], [], []>} : vector<8x64xf32>, vector<64x32xf32>, vector<8x32xf32> -> vector<8x32xf32>
    %c0_18 = arith.constant 0 : index
    %c0_19 = arith.constant 0 : index
    %32 = vector.load %arg7[%c0_18, %c0_19] : memref<1x32xf32, #tpu.memory_space<vmem>>, vector<1x32xf32>
    %33 = vector.broadcast %32 : vector<1x32xf32> to vector<8x32xf32>
    %34 = arith.addf %31, %33 : vector<8x32xf32>
    %c0_20 = arith.constant 0 : index
    %c0_21 = arith.constant 0 : index
    %35 = vector.load %arg8[%c0_20, %c0_21] : memref<8x32xf32, #tpu.memory_space<vmem>>, vector<8x32xf32>
    tpu.vector_store %arg8[%c0_20, %c0_21], %34 {strides = array<i32>} : memref<8x32xf32, #tpu.memory_space<vmem>>, vector<8x32xf32>,
    return
  }
  func.func @transform_0(%arg0: i32) -> (i32, i32) {
    %c0_i32 = arith.constant 0 : i32
    %c0_i32_0 = arith.constant 0 : i32
    return %arg0, %c0_i32 : i32, i32
  }
  func.func @transform_1(%arg0: i32) -> (i32, i32) {
    %c0_i32 = arith.constant 0 : i32
    %c0_i32_0 = arith.constant 0 : i32
    %c0_i32_1 = arith.constant 0 : i32
    return %c0_i32, %c0_i32_0 : i32, i32
  }
  func.func @transform_2(%arg0: i32) -> (i32, i32) {
    %c0_i32 = arith.constant 0 : i32
    %c0_i32_0 = arith.constant 0 : i32
    %c0_i32_1 = arith.constant 0 : i32
    return %c0_i32, %c0_i32_0 : i32, i32
  }
  func.func @transform_3(%arg0: i32) -> (i32, i32) {
    %c0_i32 = arith.constant 0 : i32
    %c0_i32_0 = arith.constant 0 : i32
    %c0_i32_1 = arith.constant 0 : i32
    return %c0_i32, %c0_i32_0 : i32, i32
  }
  func.func @transform_4(%arg0: i32) -> (i32, i32) {
    %c0_i32 = arith.constant 0 : i32
    %c0_i32_0 = arith.constant 0 : i32
    %c0_i32_1 = arith.constant 0 : i32
    return %c0_i32, %c0_i32_0 : i32, i32
  }
  func.func @transform_5(%arg0: i32) -> (i32, i32) {
    %c0_i32 = arith.constant 0 : i32
    %c0_i32_0 = arith.constant 0 : i32
    %c0_i32_1 = arith.constant 0 : i32
    return %c0_i32, %c0_i32_0 : i32, i32
  }
  func.func @transform_6(%arg0: i32) -> (i32, i32) {
    %c0_i32 = arith.constant 0 : i32
    %c0_i32_0 = arith.constant 0 : i32
    %c0_i32_1 = arith.constant 0 : i32
    return %c0_i32, %c0_i32_0 : i32, i32
  }
  func.func @transform_7(%arg0: i32) -> (i32, i32) {
    %c0_i32 = arith.constant 0 : i32
    %c0_i32_0 = arith.constant 0 : i32
    return %arg0, %c0_i32 : i32, i32
  }
}

</mosaic_0001>

<bundles_post_ra>
// kernel: _forward_impl.1
= control target key start
LH: loop header
LB: loop body
LE: loop exit
PB: predicated region body
PF: predicated region fallthrough
CT: control target
= control target key end

     0   :  { %vm44_vm0 = vcmask 1044480   ;;  %v335_v1 = vmov 0.0   ;;  %vm336_vm1 = vmmov 0   ;;  %s438_s0 = inlined_call_operand.vmem [shape: f32[8,37], index: 0, kind: input, shape index: {}]   ;;  %s439_s1 = inlined_call_operand.vmem [shape: f32[37,64], index: 1, kind: input, shape index: {}]   ;;  %s440_s2 = inlined_call_operand.vmem [shape: f32[1,64], index: 2, kind: input, shape index: {}]   ;;  %s441_s3 = inlined_call_operand.vmem [shape: f32[1,64], index: 3, kind: input, shape index: {}]   ;;  %s442_s4 = inlined_call_operand.vmem [shape: f32[1,64], index: 4, kind: input, shape index: {}]   ;;  %s443_s5 = inlined_call_operand.vmem [shape: f32[64,32], index: 5, kind: input, shape index: {}]   ;;  %s444_s6 = inlined_call_operand.vmem [shape: f32[1,32], index: 6, kind: input, shape index: {}]   ;;  %s445_s7 = inlined_call_operand.hbm [shape: f32[8,32], index: 7, kind: output, shape index: {}]  }
   0x1   :  { %v32_v0 = vld [vmem:[%s439_s1 + $0x20] sm:$0x1f]  ;;  %276 = vmatprep.subr.mxu0 %v335_v1  ;;  %v31_v2 = vld [vmem:[%s439_s1 + $0x18] sm:$0xff]  ;;  %289 = vmatprep.subr.mxu1 %v335_v1 }
   0x2   :  { %277 = vmatpush3.msk.msra.mxu0 %vm44_vm0, %v32_v0  ;;  %286 = vmatprep.mubr.msk.f32.mxu0 %vm336_vm1, %v335_v1 }
   0x3   :  { %12 = vsyncpa [#allocation3], 0  ;;  %278 = vmatprep.subr.mxu0 %v335_v1  ;;  %v30_v3 = vld [vmem:[%s439_s1 + $0x10] sm:$0xff]  ;;  %305 = vmatprep.mubr.msk.f32.mxu1 %vm336_vm1, %v335_v1  ;;  %v29_v4 = vld [vmem:[%s439_s1 + $0x8] sm:$0xff]  ;;  %vm40_vm2 = vcmask 302080   ;;  %vm118_vm3 = vcmask 523264  }
   0x4   :  { %279 = vmatpush3.msra.mxu0 %v31_v2  ;;  %v28_v5 = vld [vmem:[%s439_s1] sm:$0xff]  ;;  %v157_v17 = vld [vmem:[%s443_s5 + $0x38] sm:$0xff]  ;;  %v156_v18 = vld [vmem:[%s443_s5 + $0x30] sm:$0xff]  ;;  %s337_s10 = smov [#allocation2]   ;;  %vm238_vm4 = vcmask 261120  }
   0x5   :  { %280 = vmatprep.subr.mxu0 %v335_v1  ;;  %v27_v6 = vld [vmem:[%s438_s0] sm:$0xff]  ;;  %290 = vmatpush3.msra.mxu1 %v157_v17  ;;  %v155_v19 = vld [vmem:[%s443_s5 + $0x28] sm:$0xff]  ;;  %v153_v21 = vld [vmem:[%s443_s5 + $0x18] sm:$0xff]  ;;  %s246_s11 = sshll.u32 %s337_s10, 4  ;;  %s247_s11 = int_to_ptr.vmem [resolvable:$true] %s246_s11 }
   0x6   :  { %281 = vmatpush3.msra.mxu0 %v30_v3  ;;  %v254_v7 = vld [vmem:[%s440_s2] ss:$0 sm:$0xff]  ;;  %291 = vmatprep.subr.mxu1 %v335_v1  ;;  %v152_v22 = vld [vmem:[%s443_s5 + $0x10] sm:$0xff]  ;;  %v151_v23 = vld [vmem:[%s443_s5 + $0x8] sm:$0xff]  ;;  %p318_p1 = scmp.lt.s32.totalorder %s247_s11, %s247_s11 }
   0x7   :  { %282 = vmatprep.subr.mxu0 %v335_v1  ;;  %292 = vmatpush3.msra.mxu1 %v156_v18  ;;  %v154_v20 = vld [vmem:[%s443_s5 + $0x20] sm:$0xff] }
   0x8   :  { %283 = vmatpush3.msra.mxu0 %v29_v4  ;;  %293 = vmatprep.subr.mxu1 %v335_v1  ;;  %v150_v24 = vld [vmem:[%s443_s5] sm:$0xff] }
   0x9   :  { %284 = vmatprep.subr.mxu0 %v335_v1  ;;  %294 = vmatpush3.msra.mxu1 %v155_v19  ;;  %v257_v28 = vld [vmem:[%s441_s3] ss:$0 sm:$0xff]  ;;  %s313_s3 = scalar_lea.vmem %s247_s11, 128 }
   0xa   :  { %285 = vmatpush3.msra.mxu0 %v28_v5  ;;  %295 = vmatprep.subr.mxu1 %v335_v1  ;;  %v258_v31 = vld [vmem:[%s442_s4] ss:$0 sm:$0xff]  ;;  %p314_p0 = scmp.ne.s32.totalorder %s247_s11, %s313_s3  ;;  %p319_p2 = scmp.lt.s32.totalorder %s313_s3, %s313_s3 }
   0xb   :  { %287 = vmatmul.mubr.msk.f32.vlgmr.msra.gmra.mxu0 %vm40_vm2, %v27_v6  ;;  %296 = vmatpush3.msra.mxu1 %v154_v20  ;;  %v259_v35 = vld [vmem:[%s444_s6] ss:$0 sm:$0xff] }
   0xc   :  { %297 = vmatprep.subr.mxu1 %v335_v1  ;;  %p320_p3 = por %p319_p2, %p318_p1 }
   0xd   :  { %298 = vmatpush3.msra.mxu1 %v153_v21 }
   0xe   :  { %299 = vmatprep.subr.mxu1 %v335_v1  ;;  %p321_p4 = pnand %p320_p3, %p314_p0 }
   0xf   :  { %300 = vmatpush3.msra.mxu1 %v152_v22 }
  0x10   :  { %301 = vmatprep.subr.mxu1 %v335_v1 }
  0x11   :  { %302 = vmatpush3.msra.mxu1 %v151_v23 }
  0x12   :  { %303 = vmatprep.subr.mxu1 %v335_v1 }
  0x13   :  { %304 = vmatpush3.msra.mxu1 %v150_v24 }
  0xcb   :  { %v114_v8 = vpop.f32.mrf.mxu0 }
  0xcc   :  { %v115_v9 = vadd.f32 %v254_v7, %v114_v8 }
  0xcd   :  { %v288_v10 = vpop.f32.mrf.mxu0 }
  0xce   :  { %v119_v11 = vsel %vm118_vm3, %v115_v9, 0.0 }
  0xcf   :  { %120 = vadd.xlane.f32.xlu0 %v119_v11 }
 0x158   :  { %v121_v12 = vpop.xlane.xlu0 %120 }
 0x159   :  { %v123_v13 = vmul.f32 0.015625, %v121_v12 }
 0x15b   :  { %v124_v14 = vsub.f32 %v115_v9, %v123_v13 }
 0x15d   :  { %v125_v15 = vmul.f32 %v124_v14, %v124_v14 }
 0x15f   :  { %v126_v16 = vsel %vm118_vm3, %v125_v15, 0.0 }
 0x160   :  { %127 = vadd.xlane.f32.xlu0 %v126_v16 }
 0x1e9   :  { %v128_v25 = vpop.xlane.xlu0 %127 }
 0x1ea   :  { %v129_v26 = vmul.f32 0.015625, %v128_v25 }
 0x1ec   :  { %v131_v27 = vadd.f32 1e-05, %v129_v26 }
 0x1ee   :  { %311 = vrsqrt.f32 %v131_v27 }
 0x1fb   :  { %v312_v29 = vpop.eup %311 }
 0x1fc   :  { %v139_v30 = vmul.f32 %v312_v29, %v257_v28 }
 0x1fe   :  { %v140_v32 = vmul.f32 %v139_v30, %v124_v14 }
 0x200   :  { %v148_v33 = vadd.f32 %v258_v31, %v140_v32 }
 0x202   :  { %v149_v34 = vmax.f32 %v148_v33, 0.0 }
 0x204   :  { %306 = vmatmul.mubr.msk.f32.vlgmr.msra.gmra.mxu1 %vm118_vm3, %v149_v34 }
 0x2c4   :  { %v234_v36 = vpop.f32.mrf.mxu1 }
 0x2c5   :  { %v235_v37 = vadd.f32 %v259_v35, %v234_v36 }
 0x2c6   :  { %v307_v38 = vpop.f32.mrf.mxu1 }
 0x2c7   :  { %239 = vst.msk [vmem:[#allocation2] sm:$0xff] %vm238_vm4, %v235_v37 }
 0x2c8   :  { %324 = shalt.err (!%p321_p4)
}
 0x2c9   :  { %249 = dma.vmem_to_hbm [thread:$0]  %s247_s11, 128, %s445_s7, [#allocation3]  }
 0x2ca   :  { %333 = dma.done.wait [#allocation3], 128  }
 0x2cb   :  { %334 = vsyncadd [#allocation3], 4294967168 }
 0x2cc   :  { %253 = vsyncpa [#allocation3], 1 }

</bundles_post_ra>
